<compile_context>
chip_gen: v7x
topology: tpu7x:2x2x1
jax: 0.10.0
libtpu: 0.0.40
codegen_flags: <defaults>
</compile_context>

<pallas_src>
import functools
import math

import jax
import jax.numpy as jnp
from jax.experimental import pallas as pl
from jax.experimental.pallas import tpu as pltpu


def _sdpa_kernel(*refs, inv_temper, has_mask, mxu_dtype):
    if has_mask:
        q_ref, k_ref, v_ref, mask_ref, out_ref, attn_ref = refs
    else:
        q_ref, k_ref, v_ref, out_ref, attn_ref = refs

    block_b, n, d_k = q_ref.shape
    _, m, d_v = v_ref.shape

    q = q_ref[...]            # (block_b, n, d_k)
    k = k_ref[...]            # (block_b, m, d_k)
    v = v_ref[...]            # (block_b, m, d_v)

    # Fold 1/sqrt(d_k) into q: touches block_b*n*d_k elements instead of block_b*n*m.
    q = q * jnp.asarray(inv_temper, dtype=q.dtype)

    if mxu_dtype is not None:                      # bf16 MXU inputs on v6e/v7x
        q = q.astype(mxu_dtype)
        k = k.astype(mxu_dtype)

    # scores = q @ k^T: contract the last dim of both operands directly
    # (no explicit k.T / XLU transpose).  f32 accumulation on the MXU.
    scores = jnp.einsum("bnd,bmd->bnm", q, k,
                        preferred_element_type=jnp.float32)    # (block_b, n, m)

    if has_mask:
        # masked_fill(mask, -inf); int8 mask, nonzero == masked out.
        # NOTE: fully-masked rows produce NaN, same as the PyTorch reference.
        scores = jnp.where(mask_ref[...] != 0, -jnp.inf, scores)

    # Numerically stable softmax over keys, all in f32 (v5e has no bf16 VPU/EUP,
    # and this keeps 1e-5 parity with the f32 reference).
    row_max = jnp.max(scores, axis=-1, keepdims=True)
    p = jnp.exp(scores - row_max)
    denom = jnp.sum(p, axis=-1, keepdims=True)
    # approx=True would move this to the (idle) EUP slot, but exact reciprocal
    # keeps 1e-5 parity with the reference.
    attn = p * pl.reciprocal(denom, approx=False)              # (block_b, n, m) f32

    # TODO(synk): nn.Dropout(0.1) on attn is identity in eval mode; training-mode
    # dropout (stateful RNG) is omitted.

    pv = attn.astype(mxu_dtype) if mxu_dtype is not None else attn
    vv = v.astype(mxu_dtype) if mxu_dtype is not None else v
    out = jnp.einsum("bnm,bmd->bnd", pv, vv,
                     preferred_element_type=jnp.float32)       # (block_b, n, d_v)

    # Lane-dense writeback: batch is folded into the lane (last) axis so the
    # output VMEM tiles / HBM DMAs are dense (n, block_b*d_v) / (n, block_b*m)
    # slabs instead of narrow <128-lane blocks.  The per-batch stores below use
    # static lane offsets (kept instead of an unaligned lane-concat for lowering
    # robustness across Mosaic versions).
    for b in range(block_b):                       # static unroll
        out_ref[0, :, b * d_v:(b + 1) * d_v] = out[b].astype(out_ref.dtype)
        attn_ref[0, :, b * m:(b + 1) * m] = attn[b].astype(attn_ref.dtype)


def _pick_block_b(B, n, m, d_k, d_v, in_itemsize,
                  vmem_budget_bytes=8 * 1024 * 1024):
    """Largest divisor of B whose fused (double-buffered) tile fits the budget.

    The budget is deliberately conservative so the same choice is safe on v7x
    (64 MiB physical / 32 MiB scoped VMEM, half of v5e/v6e).
    """
    best = 1
    for bt in range(1, B + 1):
        if B % bt:
            continue
        in_bytes = bt * (n * d_k + m * d_k + m * d_v) * in_itemsize + bt * n * m  # int8 mask
        out_bytes = bt * (n * d_v + n * m) * 4
        if 2 * (in_bytes + out_bytes) <= vmem_budget_bytes:    # double buffering
            best = bt
    return best


def scaled_dot_product_attention(q, k, v, attn_mask=None, *, block_b=None,
                                 mxu_dtype=None):
    """Pallas TPU ScaledDotProductAttention forward.

    q: [B, n, d_k], k: [B, m, d_k], v: [B, m, d_v],
    attn_mask: [B, n, m] (bool/int, nonzero == masked out) or None.
    Returns (output [B, n, d_v], attn [B, n, m]) like the PyTorch module.
    mxu_dtype=jnp.bfloat16 feeds bf16 to the MXU (v6e/v7x); softmax stays f32.
    """
    B, n, d_k = q.shape
    Bk, m, d_k2 = k.shape
    Bv, mv, d_v = v.shape
    assert (Bk, d_k2) == (B, d_k) and (Bv, mv) == (B, m)
    inv_temper = 1.0 / math.sqrt(d_k)

    has_mask = attn_mask is not None
    inputs = [q, k, v]
    if has_mask:
        assert attn_mask.shape == (B, n, m)
        inputs.append((attn_mask != 0).astype(jnp.int8))       # 1-byte mask stream

    if block_b is None:
        block_b = _pick_block_b(B, n, m, d_k, d_v, q.dtype.itemsize)
    assert B % block_b == 0
    grid_b = B // block_b

    # TODO(synk): for long sequences (n, m >> 1k) switch to a flash-attention
    # style (q, k)-tiled grid with online softmax; this kernel materializes the
    # full (block_b, n, m) score tile in VMEM.

    kernel = functools.partial(_sdpa_kernel, inv_temper=inv_temper,
                               has_mask=has_mask, mxu_dtype=mxu_dtype)

    in_specs = [
        pl.BlockSpec((block_b, n, d_k), lambda g: (g, 0, 0)),
        pl.BlockSpec((block_b, m, d_k), lambda g: (g, 0, 0)),
        pl.BlockSpec((block_b, m, d_v), lambda g: (g, 0, 0)),
    ]
    if has_mask:
        in_specs.append(pl.BlockSpec((block_b, n, m), lambda g: (g, 0, 0)))

    out_lane, attn_lane = pl.pallas_call(
        kernel,
        out_shape=(
            jax.ShapeDtypeStruct((grid_b, n, block_b * d_v), q.dtype),
            jax.ShapeDtypeStruct((grid_b, n, block_b * m), jnp.float32),
        ),
        grid_spec=pltpu.PrefetchScalarGridSpec(
            num_scalar_prefetch=0,
            grid=(grid_b,),
            in_specs=in_specs,
            out_specs=[
                pl.BlockSpec((1, n, block_b * d_v), lambda g: (g, 0, 0)),
                pl.BlockSpec((1, n, block_b * m), lambda g: (g, 0, 0)),
            ],
        ),
        compiler_params=pltpu.CompilerParams(
            dimension_semantics=("parallel",),    # batch axis shards across TCs (v7x)
            vmem_limit_bytes=32 * 1024 * 1024,
        ),
    )(*inputs)

    # Wrapper-side layout plumbing back to the module's [B, n, *] layout.
    out = out_lane.reshape(grid_b, n, block_b, d_v)
    out = jnp.transpose(out, (0, 2, 1, 3)).reshape(B, n, d_v)
    attn = attn_lane.reshape(grid_b, n, block_b, m)
    attn = jnp.transpose(attn, (0, 2, 1, 3)).reshape(B, n, m)
    return out, attn


def _reference(q, k, v, attn_mask=None):
    d_k = q.shape[-1]
    scores = jnp.einsum("bnd,bmd->bnm", q, k) / math.sqrt(d_k)
    if attn_mask is not None:
        scores = jnp.where(attn_mask, -jnp.inf, scores)
    attn = jax.nn.softmax(scores, axis=-1)
    out = jnp.einsum("bnm,bmd->bnd", attn, v)
    return out, attn


if __name__ == "__main__":
    # num_head=4, batch=2 -> B=8 ; n=8 queries, m=16 keys, d_k=d_v=32
    B, n, m, d_k, d_v = 8, 8, 16, 32, 32
    key = jax.random.PRNGKey(0)
    kq, kk, kv, km = jax.random.split(key, 4)
    q = jax.random.normal(kq, (B, n, d_k), dtype=jnp.float32)
    k = jax.random.normal(kk, (B, m, d_k), dtype=jnp.float32)
    v = jax.random.normal(kv, (B, m, d_v), dtype=jnp.float32)
    # Boolean mask (True == masked out); keep at least one visible key per row.
    attn_mask = jax.random.bernoulli(km, p=0.2, shape=(B, n, m))
    attn_mask = attn_mask.at[:, :, 0].set(False)

    # Masked, f32 path.
    out, attn = scaled_dot_product_attention(q, k, v, attn_mask)
    jax.block_until_ready((out, attn))
    ref_out, ref_attn = _reference(q, k, v, attn_mask)
    assert out.shape == (B, n, d_v) and attn.shape == (B, n, m)
    assert jnp.allclose(out, ref_out, atol=1e-5, rtol=1e-5)
    assert jnp.allclose(attn, ref_attn, atol=1e-5, rtol=1e-5)

    # Mask-free variant (no zero-mask HBM stream, separate kernel specialization).
    out_nm, attn_nm = scaled_dot_product_attention(q, k, v, None)
    jax.block_until_ready((out_nm, attn_nm))
    ref_out_nm, ref_attn_nm = _reference(q, k, v, None)
    assert jnp.allclose(out_nm, ref_out_nm, atol=1e-5, rtol=1e-5)
    assert jnp.allclose(attn_nm, ref_attn_nm, atol=1e-5, rtol=1e-5)

    # bf16 MXU-input fast path (v6e/v7x); softmax stays f32, looser tolerance.
    out_bf, attn_bf = scaled_dot_product_attention(q, k, v, attn_mask,
                                                   mxu_dtype=jnp.bfloat16)
    jax.block_until_ready((out_bf, attn_bf))
    assert jnp.allclose(out_bf, ref_out, atol=5e-2, rtol=5e-2)
    assert jnp.allclose(attn_bf, ref_attn, atol=5e-2, rtol=5e-2)

    print("KERNEL_OK")
</pallas_src>

<mosaic_0001>
module attributes {stable_mosaic.version = 11 : i64} {
  func.func @_sdpa_kernel(%arg0: i32, %arg1: memref<8x8x32xf32, #tpu.memory_space<vmem>>, %arg2: memref<8x16x32xf32, #tpu.memory_space<vmem>>, %arg3: memref<8x16x32xf32, #tpu.memory_space<vmem>>, %arg4: memref<8x8x16xi8, #tpu.memory_space<vmem>>, %arg5: memref<1x8x256xf32, #tpu.memory_space<vmem>>, %arg6: memref<1x8x128xf32, #tpu.memory_space<vmem>>) attributes {dimension_semantics = [#tpu.dimension_semantics<parallel>], iteration_bounds = array<i64: 1>, scalar_prefetch = 0 : i64, scratch_operands = 0 : i64, tpu.core_type = #tpu.core_type<tc>, window_params = [{transform_indices = @transform_0, window_bounds = array<i64: 8, 8, 32>}, {transform_indices = @transform_1, window_bounds = array<i64: 8, 16, 32>}, {transform_indices = @transform_2, window_bounds = array<i64: 8, 16, 32>}, {transform_indices = @transform_3, window_bounds = array<i64: 8, 8, 16>}, {transform_indices = @transform_4, window_bounds = array<i64: 1, 8, 256>}, {transform_indices = @transform_5, window_bounds = array<i64: 1, 8, 128>}]} {
    %c0 = arith.constant 0 : index
    %c0_0 = arith.constant 0 : index
    %c0_1 = arith.constant 0 : index
    %0 = vector.load %arg1[%c0, %c0_0, %c0_1] : memref<8x8x32xf32, #tpu.memory_space<vmem>>, vector<8x8x32xf32>
    %c0_2 = arith.constant 0 : index
    %c0_3 = arith.constant 0 : index
    %c0_4 = arith.constant 0 : index
    %1 = vector.load %arg2[%c0_2, %c0_3, %c0_4] : memref<8x16x32xf32, #tpu.memory_space<vmem>>, vector<8x16x32xf32>
    %c0_5 = arith.constant 0 : index
    %c0_6 = arith.constant 0 : index
    %c0_7 = arith.constant 0 : index
    %2 = vector.load %arg3[%c0_5, %c0_6, %c0_7] : memref<8x16x32xf32, #tpu.memory_space<vmem>>, vector<8x16x32xf32>
    %cst = arith.constant 0.176776692 : f32
    %3 = vector.broadcast %cst : f32 to vector<8x8x32xf32>
    %4 = arith.mulf %0, %3 : vector<8x8x32xf32>
    "tpu.trace_start"() <{level = 10 : i32, message = "bnd,bmd->bnm"}> : () -> ()
    %cst_8 = arith.constant dense<0.000000e+00> : vector<8x8x16xf32>
    %5 = tpu.matmul %4, %1, %cst_8 {dimension_numbers = #tpu.dot_dimension_numbers<[2], [2], [1], [1], [0, 0, 0, 1, 1, 1], [0], [0]>} : vector<8x8x32xf32>, vector<8x16x32xf32>, vector<8x8x16xf32> -> vector<8x8x16xf32>
    "tpu.trace_stop"() : () -> ()
    %c0_9 = arith.constant 0 : index
    %c0_10 = arith.constant 0 : index
    %c0_11 = arith.constant 0 : index
    %6 = vector.load %arg4[%c0_9, %c0_10, %c0_11] : memref<8x8x16xi8, #tpu.memory_space<vmem>>, vector<8x8x16xi8>
    %c0_i8 = arith.constant 0 : i8
    %7 = vector.broadcast %c0_i8 : i8 to vector<8x8x16xi8>
    %8 = arith.cmpi ne, %6, %7 : vector<8x8x16xi8>
    %cst_12 = arith.constant 0xFF800000 : f32
    %9 = vector.broadcast %cst_12 : f32 to vector<8x8x16xf32>
    %10 = arith.select %8, %9, %5 : vector<8x8x16xi1>, vector<8x8x16xf32>
    %cst_13 = arith.constant dense<0xFF800000> : vector<8x8xf32>
    %11 = vector.multi_reduction <maximumf>, %10, %cst_13 [2] : vector<8x8x16xf32> to vector<8x8xf32>
    %12 = vector.shape_cast %11 : vector<8x8xf32> to vector<8x8x1xf32>
    %13 = vector.broadcast %12 : vector<8x8x1xf32> to vector<8x8x16xf32>
    %14 = arith.subf %10, %13 : vector<8x8x16xf32>
    %15 = math.exp %14 : vector<8x8x16xf32>
    %cst_14 = arith.constant dense<0.000000e+00> : vector<8x8xf32>
    %16 = vector.multi_reduction <add>, %15, %cst_14 [2] : vector<8x8x16xf32> to vector<8x8xf32>
    %17 = vector.shape_cast %16 : vector<8x8xf32> to vector<8x8x1xf32>
    %18 = tpu.reciprocal %17 : vector<8x8x1xf32> -> vector<8x8x1xf32>
    %19 = vector.broadcast %18 : vector<8x8x1xf32> to vector<8x8x16xf32>
    %20 = arith.mulf %15, %19 : vector<8x8x16xf32>
    "tpu.trace_start"() <{level = 10 : i32, message = "bnm,bmd->bnd"}> : () -> ()
    %cst_15 = arith.constant dense<0.000000e+00> : vector<8x8x32xf32>
    %21 = tpu.matmul %20, %2, %cst_15 {dimension_numbers = #tpu.dot_dimension_numbers<[2], [1], [1], [2], [0, 0, 0, 1, 1, 2], [0], [0]>} : vector<8x8x16xf32>, vector<8x16x32xf32>, vector<8x8x32xf32> -> vector<8x8x32xf32>
    "tpu.trace_stop"() : () -> ()
    %22 = vector.extract_strided_slice %21 {offsets = [0, 0, 0], sizes = [1, 8, 32], strides = [1, 1, 1]} : vector<8x8x32xf32> to vector<1x8x32xf32>
    %23 = vector.shape_cast %22 : vector<1x8x32xf32> to vector<8x32xf32>
    %c0_16 = arith.constant 0 : index
    %c0_17 = arith.constant 0 : index
    %c0_18 = arith.constant 0 : index
    %24 = vector.load %arg5[%c0_16, %c0_17, %c0_18] : memref<1x8x256xf32, #tpu.memory_space<vmem>>, vector<1x8x32xf32>
    %25 = vector.shape_cast %24 : vector<1x8x32xf32> to vector<8x32xf32>
    %26 = vector.shape_cast %23 : vector<8x32xf32> to vector<1x8x32xf32>
    tpu.vector_store %arg5[%c0_16, %c0_17, %c0_18], %26 {strides = array<i32>} : memref<1x8x256xf32, #tpu.memory_space<vmem>>, vector<1x8x32xf32>,
    %27 = vector.extract_strided_slice %20 {offsets = [0, 0, 0], sizes = [1, 8, 16], strides = [1, 1, 1]} : vector<8x8x16xf32> to vector<1x8x16xf32>
    %28 = vector.shape_cast %27 : vector<1x8x16xf32> to vector<8x16xf32>
    %c0_19 = arith.constant 0 : index
    %c0_20 = arith.constant 0 : index
    %c0_21 = arith.constant 0 : index
    %29 = vector.load %arg6[%c0_19, %c0_20, %c0_21] : memref<1x8x128xf32, #tpu.memory_space<vmem>>, vector<1x8x16xf32>
    %30 = vector.shape_cast %29 : vector<1x8x16xf32> to vector<8x16xf32>
    %31 = vector.shape_cast %28 : vector<8x16xf32> to vector<1x8x16xf32>
    tpu.vector_store %arg6[%c0_19, %c0_20, %c0_21], %31 {strides = array<i32>} : memref<1x8x128xf32, #tpu.memory_space<vmem>>, vector<1x8x16xf32>,
    %32 = vector.extract_strided_slice %21 {offsets = [1, 0, 0], sizes = [1, 8, 32], strides = [1, 1, 1]} : vector<8x8x32xf32> to vector<1x8x32xf32>
    %33 = vector.shape_cast %32 : vector<1x8x32xf32> to vector<8x32xf32>
    %c0_22 = arith.constant 0 : index
    %c0_23 = arith.constant 0 : index
    %c32 = arith.constant 32 : index
    %34 = vector.load %arg5[%c0_22, %c0_23, %c32] : memref<1x8x256xf32, #tpu.memory_space<vmem>>, vector<1x8x32xf32>
    %35 = vector.shape_cast %34 : vector<1x8x32xf32> to vector<8x32xf32>
    %36 = vector.shape_cast %33 : vector<8x32xf32> to vector<1x8x32xf32>
    tpu.vector_store %arg5[%c0_22, %c0_23, %c32], %36 {strides = array<i32>} : memref<1x8x256xf32, #tpu.memory_space<vmem>>, vector<1x8x32xf32>,
    %37 = vector.extract_strided_slice %20 {offsets = [1, 0, 0], sizes = [1, 8, 16], strides = [1, 1, 1]} : vector<8x8x16xf32> to vector<1x8x16xf32>
    %38 = vector.shape_cast %37 : vector<1x8x16xf32> to vector<8x16xf32>
    %c0_24 = arith.constant 0 : index
    %c0_25 = arith.constant 0 : index
    %c16 = arith.constant 16 : index
    %39 = vector.load %arg6[%c0_24, %c0_25, %c16] : memref<1x8x128xf32, #tpu.memory_space<vmem>>, vector<1x8x16xf32>
    %40 = vector.shape_cast %39 : vector<1x8x16xf32> to vector<8x16xf32>
    %41 = vector.shape_cast %38 : vector<8x16xf32> to vector<1x8x16xf32>
    tpu.vector_store %arg6[%c0_24, %c0_25, %c16], %41 {strides = array<i32>} : memref<1x8x128xf32, #tpu.memory_space<vmem>>, vector<1x8x16xf32>,
    %42 = vector.extract_strided_slice %21 {offsets = [2, 0, 0], sizes = [1, 8, 32], strides = [1, 1, 1]} : vector<8x8x32xf32> to vector<1x8x32xf32>
    %43 = vector.shape_cast %42 : vector<1x8x32xf32> to vector<8x32xf32>
    %c0_26 = arith.constant 0 : index
    %c0_27 = arith.constant 0 : index
    %c64 = arith.constant 64 : index
    %44 = vector.load %arg5[%c0_26, %c0_27, %c64] : memref<1x8x256xf32, #tpu.memory_space<vmem>>, vector<1x8x32xf32>
    %45 = vector.shape_cast %44 : vector<1x8x32xf32> to vector<8x32xf32>
    %46 = vector.shape_cast %43 : vector<8x32xf32> to vector<1x8x32xf32>
    tpu.vector_store %arg5[%c0_26, %c0_27, %c64], %46 {strides = array<i32>} : memref<1x8x256xf32, #tpu.memory_space<vmem>>, vector<1x8x32xf32>,
    %47 = vector.extract_strided_slice %20 {offsets = [2, 0, 0], sizes = [1, 8, 16], strides = [1, 1, 1]} : vector<8x8x16xf32> to vector<1x8x16xf32>
    %48 = vector.shape_cast %47 : vector<1x8x16xf32> to vector<8x16xf32>
    %c0_28 = arith.constant 0 : index
    %c0_29 = arith.constant 0 : index
    %c32_30 = arith.constant 32 : index
    %49 = vector.load %arg6[%c0_28, %c0_29, %c32_30] : memref<1x8x128xf32, #tpu.memory_space<vmem>>, vector<1x8x16xf32>
    %50 = vector.shape_cast %49 : vector<1x8x16xf32> to vector<8x16xf32>
    %51 = vector.shape_cast %48 : vector<8x16xf32> to vector<1x8x16xf32>
    tpu.vector_store %arg6[%c0_28, %c0_29, %c32_30], %51 {strides = array<i32>} : memref<1x8x128xf32, #tpu.memory_space<vmem>>, vector<1x8x16xf32>,
    %52 = vector.extract_strided_slice %21 {offsets = [3, 0, 0], sizes = [1, 8, 32], strides = [1, 1, 1]} : vector<8x8x32xf32> to vector<1x8x32xf32>
    %53 = vector.shape_cast %52 : vector<1x8x32xf32> to vector<8x32xf32>
    %c0_31 = arith.constant 0 : index
    %c0_32 = arith.constant 0 : index
    %c96 = arith.constant 96 : index
    %54 = vector.load %arg5[%c0_31, %c0_32, %c96] : memref<1x8x256xf32, #tpu.memory_space<vmem>>, vector<1x8x32xf32>
    %55 = vector.shape_cast %54 : vector<1x8x32xf32> to vector<8x32xf32>
    %56 = vector.shape_cast %53 : vector<8x32xf32> to vector<1x8x32xf32>
    tpu.vector_store %arg5[%c0_31, %c0_32, %c96], %56 {strides = array<i32>} : memref<1x8x256xf32, #tpu.memory_space<vmem>>, vector<1x8x32xf32>,
    %57 = vector.extract_strided_slice %20 {offsets = [3, 0, 0], sizes = [1, 8, 16], strides = [1, 1, 1]} : vector<8x8x16xf32> to vector<1x8x16xf32>
    %58 = vector.shape_cast %57 : vector<1x8x16xf32> to vector<8x16xf32>
    %c0_33 = arith.constant 0 : index
    %c0_34 = arith.constant 0 : index
    %c48 = arith.constant 48 : index
    %59 = vector.load %arg6[%c0_33, %c0_34, %c48] : memref<1x8x128xf32, #tpu.memory_space<vmem>>, vector<1x8x16xf32>
    %60 = vector.shape_cast %59 : vector<1x8x16xf32> to vector<8x16xf32>
    %61 = vector.shape_cast %58 : vector<8x16xf32> to vector<1x8x16xf32>
    tpu.vector_store %arg6[%c0_33, %c0_34, %c48], %61 {strides = array<i32>} : memref<1x8x128xf32, #tpu.memory_space<vmem>>, vector<1x8x16xf32>,
    %62 = vector.extract_strided_slice %21 {offsets = [4, 0, 0], sizes = [1, 8, 32], strides = [1, 1, 1]} : vector<8x8x32xf32> to vector<1x8x32xf32>
    %63 = vector.shape_cast %62 : vector<1x8x32xf32> to vector<8x32xf32>
    %c0_35 = arith.constant 0 : index
    %c0_36 = arith.constant 0 : index
    %c128 = arith.constant 128 : index
    %64 = vector.load %arg5[%c0_35, %c0_36, %c128] : memref<1x8x256xf32, #tpu.memory_space<vmem>>, vector<1x8x32xf32>
    %65 = vector.shape_cast %64 : vector<1x8x32xf32> to vector<8x32xf32>
    %66 = vector.shape_cast %63 : vector<8x32xf32> to vector<1x8x32xf32>
    tpu.vector_store %arg5[%c0_35, %c0_36, %c128], %66 {strides = array<i32>} : memref<1x8x256xf32, #tpu.memory_space<vmem>>, vector<1x8x32xf32>,
    %67 = vector.extract_strided_slice %20 {offsets = [4, 0, 0], sizes = [1, 8, 16], strides = [1, 1, 1]} : vector<8x8x16xf32> to vector<1x8x16xf32>
    %68 = vector.shape_cast %67 : vector<1x8x16xf32> to vector<8x16xf32>
    %c0_37 = arith.constant 0 : index
    %c0_38 = arith.constant 0 : index
    %c64_39 = arith.constant 64 : index
    %69 = vector.load %arg6[%c0_37, %c0_38, %c64_39] : memref<1x8x128xf32, #tpu.memory_space<vmem>>, vector<1x8x16xf32>
    %70 = vector.shape_cast %69 : vector<1x8x16xf32> to vector<8x16xf32>
    %71 = vector.shape_cast %68 : vector<8x16xf32> to vector<1x8x16xf32>
    tpu.vector_store %arg6[%c0_37, %c0_38, %c64_39], %71 {strides = array<i32>} : memref<1x8x128xf32, #tpu.memory_space<vmem>>, vector<1x8x16xf32>,
    %72 = vector.extract_strided_slice %21 {offsets = [5, 0, 0], sizes = [1, 8, 32], strides = [1, 1, 1]} : vector<8x8x32xf32> to vector<1x8x32xf32>
    %73 = vector.shape_cast %72 : vector<1x8x32xf32> to vector<8x32xf32>
    %c0_40 = arith.constant 0 : index
    %c0_41 = arith.constant 0 : index
    %c160 = arith.constant 160 : index
    %74 = vector.load %arg5[%c0_40, %c0_41, %c160] : memref<1x8x256xf32, #tpu.memory_space<vmem>>, vector<1x8x32xf32>
    %75 = vector.shape_cast %74 : vector<1x8x32xf32> to vector<8x32xf32>
    %76 = vector.shape_cast %73 : vector<8x32xf32> to vector<1x8x32xf32>
    tpu.vector_store %arg5[%c0_40, %c0_41, %c160], %76 {strides = array<i32>} : memref<1x8x256xf32, #tpu.memory_space<vmem>>, vector<1x8x32xf32>,
    %77 = vector.extract_strided_slice %20 {offsets = [5, 0, 0], sizes = [1, 8, 16], strides = [1, 1, 1]} : vector<8x8x16xf32> to vector<1x8x16xf32>
    %78 = vector.shape_cast %77 : vector<1x8x16xf32> to vector<8x16xf32>
    %c0_42 = arith.constant 0 : index
    %c0_43 = arith.constant 0 : index
    %c80 = arith.constant 80 : index
    %79 = vector.load %arg6[%c0_42, %c0_43, %c80] : memref<1x8x128xf32, #tpu.memory_space<vmem>>, vector<1x8x16xf32>
    %80 = vector.shape_cast %79 : vector<1x8x16xf32> to vector<8x16xf32>
    %81 = vector.shape_cast %78 : vector<8x16xf32> to vector<1x8x16xf32>
    tpu.vector_store %arg6[%c0_42, %c0_43, %c80], %81 {strides = array<i32>} : memref<1x8x128xf32, #tpu.memory_space<vmem>>, vector<1x8x16xf32>,
    %82 = vector.extract_strided_slice %21 {offsets = [6, 0, 0], sizes = [1, 8, 32], strides = [1, 1, 1]} : vector<8x8x32xf32> to vector<1x8x32xf32>
    %83 = vector.shape_cast %82 : vector<1x8x32xf32> to vector<8x32xf32>
    %c0_44 = arith.constant 0 : index
    %c0_45 = arith.constant 0 : index
    %c192 = arith.constant 192 : index
    %84 = vector.load %arg5[%c0_44, %c0_45, %c192] : memref<1x8x256xf32, #tpu.memory_space<vmem>>, vector<1x8x32xf32>
    %85 = vector.shape_cast %84 : vector<1x8x32xf32> to vector<8x32xf32>
    %86 = vector.shape_cast %83 : vector<8x32xf32> to vector<1x8x32xf32>
    tpu.vector_store %arg5[%c0_44, %c0_45, %c192], %86 {strides = array<i32>} : memref<1x8x256xf32, #tpu.memory_space<vmem>>, vector<1x8x32xf32>,
    %87 = vector.extract_strided_slice %20 {offsets = [6, 0, 0], sizes = [1, 8, 16], strides = [1, 1, 1]} : vector<8x8x16xf32> to vector<1x8x16xf32>
    %88 = vector.shape_cast %87 : vector<1x8x16xf32> to vector<8x16xf32>
    %c0_46 = arith.constant 0 : index
    %c0_47 = arith.constant 0 : index
    %c96_48 = arith.constant 96 : index
    %89 = vector.load %arg6[%c0_46, %c0_47, %c96_48] : memref<1x8x128xf32, #tpu.memory_space<vmem>>, vector<1x8x16xf32>
    %90 = vector.shape_cast %89 : vector<1x8x16xf32> to vector<8x16xf32>
    %91 = vector.shape_cast %88 : vector<8x16xf32> to vector<1x8x16xf32>
    tpu.vector_store %arg6[%c0_46, %c0_47, %c96_48], %91 {strides = array<i32>} : memref<1x8x128xf32, #tpu.memory_space<vmem>>, vector<1x8x16xf32>,
    %92 = vector.extract_strided_slice %21 {offsets = [7, 0, 0], sizes = [1, 8, 32], strides = [1, 1, 1]} : vector<8x8x32xf32> to vector<1x8x32xf32>
    %93 = vector.shape_cast %92 : vector<1x8x32xf32> to vector<8x32xf32>
    %c0_49 = arith.constant 0 : index
    %c0_50 = arith.constant 0 : index
    %c224 = arith.constant 224 : index
    %94 = vector.load %arg5[%c0_49, %c0_50, %c224] : memref<1x8x256xf32, #tpu.memory_space<vmem>>, vector<1x8x32xf32>
    %95 = vector.shape_cast %94 : vector<1x8x32xf32> to vector<8x32xf32>
    %96 = vector.shape_cast %93 : vector<8x32xf32> to vector<1x8x32xf32>
    tpu.vector_store %arg5[%c0_49, %c0_50, %c224], %96 {strides = array<i32>} : memref<1x8x256xf32, #tpu.memory_space<vmem>>, vector<1x8x32xf32>,
    %97 = vector.extract_strided_slice %20 {offsets = [7, 0, 0], sizes = [1, 8, 16], strides = [1, 1, 1]} : vector<8x8x16xf32> to vector<1x8x16xf32>
    %98 = vector.shape_cast %97 : vector<1x8x16xf32> to vector<8x16xf32>
    %c0_51 = arith.constant 0 : index
    %c0_52 = arith.constant 0 : index
    %c112 = arith.constant 112 : index
    %99 = vector.load %arg6[%c0_51, %c0_52, %c112] : memref<1x8x128xf32, #tpu.memory_space<vmem>>, vector<1x8x16xf32>
    %100 = vector.shape_cast %99 : vector<1x8x16xf32> to vector<8x16xf32>
    %101 = vector.shape_cast %98 : vector<8x16xf32> to vector<1x8x16xf32>
    tpu.vector_store %arg6[%c0_51, %c0_52, %c112], %101 {strides = array<i32>} : memref<1x8x128xf32, #tpu.memory_space<vmem>>, vector<1x8x16xf32>,
    return
  }
  func.func @transform_0(%arg0: i32) -> (i32, i32, i32) {
    %c0_i32 = arith.constant 0 : i32
    %c0_i32_0 = arith.constant 0 : i32
    %c0_i32_1 = arith.constant 0 : i32
    return %arg0, %c0_i32, %c0_i32_0 : i32, i32, i32
  }
  func.func @transform_1(%arg0: i32) -> (i32, i32, i32) {
    %c0_i32 = arith.constant 0 : i32
    %c0_i32_0 = arith.constant 0 : i32
    %c0_i32_1 = arith.constant 0 : i32
    return %arg0, %c0_i32, %c0_i32_0 : i32, i32, i32
  }
  func.func @transform_2(%arg0: i32) -> (i32, i32, i32) {
    %c0_i32 = arith.constant 0 : i32
    %c0_i32_0 = arith.constant 0 : i32
    %c0_i32_1 = arith.constant 0 : i32
    return %arg0, %c0_i32, %c0_i32_0 : i32, i32, i32
  }
  func.func @transform_3(%arg0: i32) -> (i32, i32, i32) {
    %c0_i32 = arith.constant 0 : i32
    %c0_i32_0 = arith.constant 0 : i32
    %c0_i32_1 = arith.constant 0 : i32
    return %arg0, %c0_i32, %c0_i32_0 : i32, i32, i32
  }
  func.func @transform_4(%arg0: i32) -> (i32, i32, i32) {
    %c0_i32 = arith.constant 0 : i32
    %c0_i32_0 = arith.constant 0 : i32
    %c0_i32_1 = arith.constant 0 : i32
    return %arg0, %c0_i32, %c0_i32_0 : i32, i32, i32
  }
  func.func @transform_5(%arg0: i32) -> (i32, i32, i32) {
    %c0_i32 = arith.constant 0 : i32
    %c0_i32_0 = arith.constant 0 : i32
    %c0_i32_1 = arith.constant 0 : i32
    return %arg0, %c0_i32, %c0_i32_0 : i32, i32, i32
  }
}

</mosaic_0001>

<bundles_post_ra>
// kernel: tpu_custom_call.1
= control target key start
LH: loop header
LB: loop body
LE: loop exit
PB: predicated region body
PF: predicated region fallthrough
CT: control target
= control target key end

     0   :  { %11 = vsyncpa [#allocation3], 0  ;;  %s2322_s0 = inlined_call_operand.hbm [shape: f32[8,8,32], index: 0, kind: input, shape index: {}]   ;;  %s2323_s1 = inlined_call_operand.hbm [shape: f32[8,16,32], index: 1, kind: input, shape index: {}]   ;;  %s2324_s2 = inlined_call_operand.hbm [shape: f32[8,16,32], index: 2, kind: input, shape index: {}]   ;;  %s2325_s3 = inlined_call_operand.hbm [shape: s8[8,8,16], index: 3, kind: input, shape index: {}]   ;;  %s2326_s4 = inlined_call_operand.hbm [shape: f32[1,8,256], index: 4, kind: output, shape index: {0}]   ;;  %s2327_s5 = inlined_call_operand.hbm [shape: f32[1,8,128], index: 5, kind: output, shape index: {1}]  }
   0x1   :  { %12 = vsyncpa [#allocation6], 0 }
   0x2   :  { %13 = vsyncpa [#allocation9], 0 }
   0x3   :  { %14 = vsyncpa [#allocation4], 0 }
   0x4   :  { %15 = vsyncpa [#allocation12], 0  ;;  %s2024_s18 = smov [#allocation5]   ;;  %s2025_s20 = smov [#allocation2]  }
   0x5   :  { %s33_s19 = sshll.u32 %s2024_s18, 4  ;;  %s21_s21 = sshll.u32 %s2025_s20, 4  ;;  %s34_s19 = int_to_ptr.vmem [resolvable:$true] %s33_s19  ;;  %s2074_s21 = int_to_ptr.vmem [resolvable:$true] %s21_s21 }
   0x6   :  { %s1882_s24 = scalar_lea.hbm %s2323_s1, 2048 }
   0x7   :  { %p1883_p0 = scmp.ne.s32.totalorder %s2323_s1, %s1882_s24  ;;  %p1886_p1 = scmp.lt.u32.totalorder %s1882_s24, %s2323_s1 }
   0x9   :  { %p1888_p2 = pnand %p1886_p1, %p1883_p0 }
   0xb   :  { %1891 = shalt.err (!%p1888_p2)
}
   0xc   :  { %s1892_s29 = scalar_lea.vmem %s34_s19, 2048  ;;  %p1897_p4 = scmp.lt.s32.totalorder %s34_s19, %s34_s19 }
   0xd   :  { %p1893_p3 = scmp.ne.s32.totalorder %s34_s19, %s1892_s29  ;;  %p1898_p5 = scmp.lt.s32.totalorder %s1892_s29, %s1892_s29 }
   0xf   :  { %p1899_p6 = por %p1898_p5, %p1897_p4 }
  0x11   :  { %p1900_p7 = pnand %p1899_p6, %p1893_p3 }
  0x13   :  { %1903 = shalt.err (!%p1900_p7)
}
  0x14   :  { %s2026_s30 = smov 128   ;;  %s2027_s6 = smov 8  }
  0x15   :  { %39 = dma.hbm_to_vmem [thread:$0]  %s2323_s1, 2048, %s34_s19, [#allocation6], %s2026_s30, %s2026_s30, %s2027_s6  }
  0x16   :  { %s1904_s11 = scalar_lea.hbm %s2322_s0, 1024 }
  0x17   :  { %p1905_p8 = scmp.ne.s32.totalorder %s2322_s0, %s1904_s11  ;;  %p1908_p9 = scmp.lt.u32.totalorder %s1904_s11, %s2322_s0 }
  0x19   :  { %p1910_p10 = pnand %p1908_p9, %p1905_p8 }
  0x1b   :  { %1913 = shalt.err (!%p1910_p10)
}
  0x1c   :  { %s1914_s16 = scalar_lea.vmem %s2074_s21, 1024  ;;  %p1919_p12 = scmp.lt.s32.totalorder %s2074_s21, %s2074_s21 }
  0x1d   :  { %p1915_p11 = scmp.ne.s32.totalorder %s2074_s21, %s1914_s16  ;;  %p1920_p13 = scmp.lt.s32.totalorder %s1914_s16, %s1914_s16 }
  0x1f   :  { %p1921_p0 = por %p1920_p13, %p1919_p12 }
  0x21   :  { %p1922_p1 = pnand %p1921_p0, %p1915_p11 }
  0x23   :  { %1925 = shalt.err (!%p1922_p1)
}
  0x24   :  { %27 = dma.hbm_to_vmem [thread:$0]  %s2322_s0, 1024, %s2074_s21, [#allocation3], %s2026_s30, %s2026_s30, %s2027_s6  }
  0x25   :  { %s2028_s18 = smov [#allocation7]   ;;  %s2029_s20 = smov [#allocation8]  }
  0x26   :  { %s45_s19 = sshll.u32 %s2028_s18, 4  ;;  %s57_s22 = sshll.u32 %s2029_s20, 4  ;;  %s46_s19 = int_to_ptr.vmem [resolvable:$true] %s45_s19  ;;  %s2111_s22 = int_to_ptr.vmem [resolvable:$true] %s57_s22 }
  0x27   :  { %s1926_s25 = scalar_lea.hbm %s2324_s2, 2048 }
  0x28   :  { %p1927_p2 = scmp.ne.s32.totalorder %s2324_s2, %s1926_s25  ;;  %p1930_p3 = scmp.lt.u32.totalorder %s1926_s25, %s2324_s2 }
  0x2a   :  { %p1932_p4 = pnand %p1930_p3, %p1927_p2 }
  0x2c   :  { %1935 = shalt.err (!%p1932_p4)
}
  0x2d   :  { %s1936_s0 = scalar_lea.vmem %s46_s19, 2048  ;;  %p1941_p6 = scmp.lt.s32.totalorder %s46_s19, %s46_s19 }
  0x2e   :  { %p1937_p5 = scmp.ne.s32.totalorder %s46_s19, %s1936_s0  ;;  %p1942_p7 = scmp.lt.s32.totalorder %s1936_s0, %s1936_s0 }
  0x30   :  { %p1943_p8 = por %p1942_p7, %p1941_p6 }
  0x32   :  { %p1944_p9 = pnand %p1943_p8, %p1937_p5 }
  0x34   :  { %1947 = shalt.err (!%p1944_p9)
}
  0x35   :  { %51 = dma.hbm_to_vmem [thread:$0]  %s2324_s2, 2048, %s46_s19, [#allocation6], %s2026_s30, %s2026_s30, %s2027_s6  }
  0x36   :  { %s1948_s10 = scalar_lea.hbm %s2325_s3, 256 }
  0x37   :  { %p1949_p10 = scmp.ne.s32.totalorder %s2325_s3, %s1948_s10  ;;  %p1952_p11 = scmp.lt.u32.totalorder %s1948_s10, %s2325_s3 }
  0x39   :  { %p1954_p12 = pnand %p1952_p11, %p1949_p10 }
  0x3b   :  { %1957 = shalt.err (!%p1954_p12)
}
  0x3c   :  { %s1958_s15 = scalar_lea.vmem %s2111_s22, 256  ;;  %p1963_p0 = scmp.lt.s32.totalorder %s2111_s22, %s2111_s22 }
  0x3d   :  { %p1959_p13 = scmp.ne.s32.totalorder %s2111_s22, %s1958_s15  ;;  %p1964_p1 = scmp.lt.s32.totalorder %s1958_s15, %s1958_s15 }
  0x3f   :  { %p1965_p2 = por %p1964_p1, %p1963_p0 }
  0x41   :  { %p1966_p3 = pnand %p1965_p2, %p1959_p13 }
  0x43   :  { %1969 = shalt.err (!%p1966_p3)
}
  0x44   :  { %s2030_s2 = smov 32   ;;  %s2031_s30 = smov 2  }
  0x45   :  { %63 = dma.hbm_to_vmem [thread:$0]  %s2325_s3, 256, %s2111_s22, [#allocation9], %s2030_s2, %s2030_s2, %s2031_s30  }
  0x46   :  { %2014 = dma.done.wait [#allocation3], 1024  }
  0x47   :  { %2015 = vsyncadd [#allocation3], 4294966272 }
  0x48   :  { %2016 = dma.done.wait [#allocation6], 4096  }
  0x49   :  { %2017 = vsyncadd [#allocation6], 4294963200 }
  0x4a   :  { %2018 = dma.done.wait [#allocation9], 256  }
  0x4b   :  { %2019 = vsyncadd [#allocation9], 4294967040  ;;  %v2032_v0 = vmov 0.0|0.0   ;;  %vm2033_vm0 = vmmov 0   ;;  %v2034_v1 = vmov 0.0   ;;  %vm126_vm1 = vcmask 261120  }
  0x4c   :  { %1774 = vmatprep.subr.bf16.mxu0 %v2032_v0  ;;  %1778 = vmatprep.subr.bf16.mxu1 %v2032_v0  ;;  %vm2155_vm2 = vmpackc.low %vm126_vm1, %vm126_vm1  ;;  %v86_v3 = vld [vmem:[#allocation5] sm:$0xff]  ;;  %v87_v4 = vld [vmem:[#allocation5 + $0x8] sm:$0xff]  ;;  %v2035_v45 = vmov 0   ;;  %vm807_vm8 = vcmask 130048   ;;  %s2036_s3 = smov 16   ;;  %s2037_s1 = smov 48  }
  0x4d   :  { %1666 = vmatprep.mubr.msk.f32.mxu0 %vm2033_vm0, %v2034_v1  ;;  %1673 = vmatprep.mubr.msk.f32.mxu1 %vm2033_vm0, %v2034_v1  ;;  %v88_v5 = vld [vmem:[#allocation5 + $0x10] sm:$0xff]  ;;  %v1775_v6 = vpack.c.bf16 %v87_v4, %v86_v3  ;;  %v89_v7 = vld [vmem:[#allocation5 + $0x18] sm:$0xff]  ;;  %v78_v9 = vld [vmem:[#allocation2] sm:$0xff]  ;;  %s2038_s17 = smov 64   ;;  %s2039_s18 = smov 80  }
  0x4e   :  { %v1779_v8 = vpack.c.bf16 %v89_v7, %v88_v5  ;;  %v79_v10 = vld [vmem:[#allocation2 + $0x8] sm:$0xff]  ;;  %v90_v11 = vld [vmem:[#allocation5 + $0x20] sm:$0xff]  ;;  %v92_v13 = vld [vmem:[#allocation5 + $0x30] sm:$0xff]  ;;  %v118_v15 = vmul.f32 0.17677669, %v78_v9  ;;  %s2040_s19 = smov 96  }
  0x4f   :  { %1777 = vmatpush3.bf16.xpose.msk.msra.mxu0 %vm2155_vm2, %v1775_v6  ;;  %v91_v12 = vld [vmem:[#allocation5 + $0x28] sm:$0xff]  ;;  %v93_v14 = vld [vmem:[#allocation5 + $0x38] sm:$0xff]  ;;  %v119_v16 = vmul.f32 0.17677669, %v79_v10  ;;  %v80_v19 = vld [vmem:[#allocation2 + $0x10] sm:$0xff]  ;;  %s2041_s20 = smov 112  }
  0x50   :  { %1781 = vmatpush3.bf16.xpose.msk.msra.mxu1 %vm2155_vm2, %v1779_v8  ;;  %1782 = vmatprep.subr.bf16.mxu0 %v2032_v0  ;;  %v1783_v17 = vpack.c.bf16 %v91_v12, %v90_v11  ;;  %v1787_v18 = vpack.c.bf16 %v93_v14, %v92_v13  ;;  %v81_v20 = vld [vmem:[#allocation2 + $0x18] sm:$0xff]  ;;  %v94_v21 = vld [vmem:[#allocation5 + $0x40] sm:$0xff]  ;;  %v95_v22 = vld [vmem:[#allocation5 + $0x48] sm:$0xff]  ;;  %v120_v25 = vmul.f32 0.17677669, %v80_v19  ;;  %s2042_s22 = smov [#allocation10]  }
  0x51   :  { %1786 = vmatprep.subr.bf16.mxu1 %v2032_v0  ;;  %v96_v23 = vld [vmem:[#allocation5 + $0x50] sm:$0xff]  ;;  %v97_v24 = vld [vmem:[#allocation5 + $0x58] sm:$0xff]  ;;  %v121_v26 = vmul.f32 0.17677669, %v81_v20  ;;  %v1791_v27 = vpack.c.bf16 %v95_v22, %v94_v21  ;;  %v82_v29 = vld [vmem:[#allocation2 + $0x20] sm:$0xff]  ;;  %s1557_s23 = sshll.u32 %s2042_s22, 4  ;;  %s1558_s23 = int_to_ptr.vmem [resolvable:$true] %s1557_s23 }
  0x52   :  { %v1795_v28 = vpack.c.bf16 %v97_v24, %v96_v23  ;;  %v83_v30 = vld [vmem:[#allocation2 + $0x28] sm:$0xff]  ;;  %v98_v31 = vld [vmem:[#allocation5 + $0x60] sm:$0xff]  ;;  %v100_v33 = vld [vmem:[#allocation5 + $0x70] sm:$0xff]  ;;  %v122_v35 = vmul.f32 0.17677669, %v82_v29  ;;  %s2043_s24 = smov [#allocation11]   ;;  %p1975_p5 = scmp.lt.s32.totalorder %s1558_s23, %s1558_s23 }
  0x53   :  { %v99_v32 = vld [vmem:[#allocation5 + $0x68] sm:$0xff]  ;;  %v101_v34 = vld [vmem:[#allocation5 + $0x78] sm:$0xff]  ;;  %v123_v36 = vmul.f32 0.17677669, %v83_v30  ;;  %v84_v39 = vld [vmem:[#allocation2 + $0x30] sm:$0xff]  ;;  %s1567_s25 = sshll.u32 %s2043_s24, 4  ;;  %s1568_s25 = int_to_ptr.vmem [resolvable:$true] %s1567_s25 }
  0x54   :  { %v1799_v37 = vpack.c.bf16 %v99_v32, %v98_v31  ;;  %v1803_v38 = vpack.c.bf16 %v101_v34, %v100_v33  ;;  %v85_v40 = vld [vmem:[#allocation2 + $0x38] sm:$0xff]  ;;  %v124_v41 = vmul.f32 0.17677669, %v84_v39  ;;  %v759_v43 = vld [vmem:[#allocation8] sm:$0x3]  ;;  %s1970_s26 = scalar_lea.vmem %s1558_s23, 256 }
  0x55   :  { %v125_v42 = vmul.f32 0.17677669, %v85_v40  ;;  %v760_v44 = vld [vmem:[#allocation8 + $0x2] sm:$0x3]  ;;  %vm767_vm3 = vnez %v759_v43  ;;  %v761_v48 = vld [vmem:[#allocation8 + $0x4] sm:$0x3]  ;;  %p1971_p4 = scmp.ne.s32.totalorder %s1558_s23, %s1970_s26  ;;  %p1976_p6 = scmp.lt.s32.totalorder %s1970_s26, %s1970_s26 }
  0x56   :  { %1667 = vmatmul.mubr.msk.f32.vlgmr.msra.gmra.mrb[0].mxu0 %vm126_vm1, %v118_v15  ;;  %vm768_vm4 = vnez %v760_v44  ;;  %v775_v46 = vsel %vm767_vm3, 16843009, %v2035_v45  ;;  %v762_v50 = vld [vmem:[#allocation8 + $0x6] sm:$0x3]  ;;  %vm769_vm5 = vnez %v761_v48  ;;  %v763_v58 = vld [vmem:[#allocation8 + $0x8] sm:$0x3] }
  0x57   :  { %1674 = vmatmul.mubr.msk.f32.vlgmr.msra.gmra.mrb[0].mxu1 %vm126_vm1, %v119_v16  ;;  %1785 = vmatpush3.bf16.xpose.msk.msra.mxu0 %vm2155_vm2, %v1783_v17  ;;  %v776_v47 = vsel %vm768_vm4, 16843009, %v2035_v45  ;;  %v783_v49 = vunpack.c.0.s8 %v775_v46  ;;  %vm770_vm6 = vnez %v762_v50  ;;  %v777_v52 = vsel %vm769_vm5, 16843009, %v2035_v45  ;;  %v764_v63 = vld [vmem:[#allocation8 + $0xa] sm:$0x3]  ;;  %p1977_p7 = por %p1976_p6, %p1975_p5 }
  0x58   :  { %1789 = vmatpush3.bf16.xpose.msk.msra.mxu1 %vm2155_vm2, %v1787_v18  ;;  %1680 = vmatprep.mubr.msk.f32.mxu0 %vm2033_vm0, %v2034_v1  ;;  %v784_v51 = vunpack.c.0.s8 %v776_v47  ;;  %v778_v54 = vsel %vm770_vm6, 16843009, %v2035_v45  ;;  %v785_v62 = vunpack.c.0.s8 %v777_v52  ;;  %vm771_vm10 = vnez %v763_v58  ;;  %v765_v10 = vld [vmem:[#allocation8 + $0xc] sm:$0x3]  ;;  %v766_v15 = vld [vmem:[#allocation8 + $0xe] sm:$0x3] }
  0x59   :  { %1687 = vmatprep.mubr.msk.f32.mxu1 %vm2033_vm0, %v2034_v1  ;;  %1790 = vmatprep.subr.bf16.mxu0 %v2032_v0  ;;  %vm791_vm7 = vcmp.ne.s32.totalorder %v783_v49, 0  ;;  %v786_v2 = vunpack.c.0.s8 %v778_v54  ;;  %vm772_vm11 = vnez %v764_v63  ;;  %v779_v4 = vsel %vm771_vm10, 16843009, %v2035_v45  ;;  %p1978_p8 = pnand %p1977_p7, %p1971_p4 }
  0x5a   :  { %1794 = vmatprep.subr.bf16.mxu1 %v2032_v0  ;;  %vm792_vm9 = vcmp.ne.s32.totalorder %v784_v51, 0  ;;  %vm793_vm12 = vcmp.ne.s32.totalorder %v785_v62, 0  ;;  %v780_v6 = vsel %vm772_vm11, 16843009, %v2035_v45  ;;  %v787_v14 = vunpack.c.0.s8 %v779_v4 }
  0x5b   :  { %vm794_vm13 = vcmp.ne.s32.totalorder %v786_v2, 0  ;;  %v788_v16 = vunpack.c.0.s8 %v780_v6  ;;  %vm773_vm14 = vnez %v765_v10  ;;  %vm774_vm15 = vnez %v766_v15 }
  0x5c   :  { %v781_v18 = vsel %vm773_vm14, 16843009, %v2035_v45  ;;  %v782_v20 = vsel %vm774_vm15, 16843009, %v2035_v45  ;;  %vm1491_vm6 = vcmask 261248   ;;  %vm1529_vm10 = vcmask 786048  }
  0x5d   :  { %vm796_vm3 = vcmp.ne.s32.totalorder %v788_v16, 0  ;;  %v790_v29 = vunpack.c.0.s8 %v782_v20  ;;  %v105_v20 = vld [vmem:[#allocation7 + $0x18] sm:$0xff]  ;;  %vm1539_vm11 = vcmask 917248  }
  0x5e   :  { %1681 = vmatmul.mubr.msk.f32.vlgmr.msra.gmra.mrb[2].mxu0 %vm126_vm1, %v120_v25 }
  0x5f   :  { %1688 = vmatmul.mubr.msk.f32.vlgmr.msra.gmra.mrb[2].mxu1 %vm126_vm1, %v121_v26  ;;  %1793 = vmatpush3.bf16.xpose.msk.msra.mxu0 %vm2155_vm2, %v1791_v27  ;;  %v789_v27 = vunpack.c.0.s8 %v781_v18  ;;  %vm798_vm5 = vcmp.ne.s32.totalorder %v790_v29, 0 }
  0x60   :  { %1797 = vmatpush3.bf16.xpose.msk.msra.mxu1 %vm2155_vm2, %v1795_v28  ;;  %1694 = vmatprep.mubr.msk.f32.mxu0 %vm2033_vm0, %v2034_v1 }
  0x61   :  { %1701 = vmatprep.mubr.msk.f32.mxu1 %vm2033_vm0, %v2034_v1  ;;  %1798 = vmatprep.subr.bf16.mxu0 %v2032_v0  ;;  %vm797_vm4 = vcmp.ne.s32.totalorder %v789_v27, 0 }
  0x62   :  { %1802 = vmatprep.subr.bf16.mxu1 %v2032_v0 }
  0x66   :  { %1695 = vmatmul.mubr.msk.f32.vlgmr.msra.gmra.mrb[4].mxu0 %vm126_vm1, %v122_v35 }
  0x67   :  { %1702 = vmatmul.mubr.msk.f32.vlgmr.msra.gmra.mrb[4].mxu1 %vm126_vm1, %v123_v36  ;;  %1801 = vmatpush3.bf16.xpose.msk.msra.mxu0 %vm2155_vm2, %v1799_v37 }
  0x68   :  { %1805 = vmatpush3.bf16.xpose.msk.msra.mxu1 %vm2155_vm2, %v1803_v38  ;;  %1708 = vmatprep.mubr.msk.f32.mxu0 %vm2033_vm0, %v2034_v1  ;;  %vm795_vm2 = vcmp.ne.s32.totalorder %v787_v14, 0  ;;  %v103_v14 = vld [vmem:[#allocation7 + $0x8] sm:$0xff] }
  0x69   :  { %1715 = vmatprep.mubr.msk.f32.mxu1 %vm2033_vm0, %v2034_v1  ;;  %1806 = vmatprep.subr.bf16.mxu0 %v2032_v0 }
  0x6a   :  { %1809 = vmatprep.subr.bf16.mxu1 %v2032_v0 }
  0x6e   :  { %1709 = vmatmul.mubr.msk.f32.vlgmr.msra.gmra.mrb[6].mxu0 %vm126_vm1, %v124_v41 }
  0x6f   :  { %1716 = vmatmul.mubr.msk.f32.vlgmr.msra.gmra.mrb[6].mxu1 %vm126_vm1, %v125_v42  ;;  %1722 = vmatprep.mubr.msk.f32.mxu0 %vm2033_vm0, %v2034_v1 }
  0x70   :  { %1729 = vmatprep.mubr.msk.f32.mxu1 %vm2033_vm0, %v2034_v1 }
 0x129   :  { %v202_v53 = vpop.f32.mrb[0].mxu0 }
 0x12a   :  { %v2207_v55 = vsel %vm791_vm7, -inf, %v202_v53  ;;  %v1668_v56 = vpop.f32.mrb[1].mxu0  ;;  %v281_v57 = vpop.f32.mrb[0].mxu1  ;;  %vm1502_vm7 = vcmask 392448  }
 0x12b   :  { %v808_v59 = vsel %vm807_vm8, %v2207_v55, -inf  ;;  %v2211_v60 = vsel %vm792_vm9, -inf, %v281_v57  ;;  %v1675_v61 = vpop.f32.mrb[1].mxu1  ;;  %vm1519_vm9 = vcmask 654848  }
 0x12c   :  { %809 = vmax.xlane.f32.xlu0 %v808_v59  ;;  %v811_v3 = vsel %vm807_vm8, %v2211_v60, -inf }
 0x130   :  { %812 = vmax.xlane.f32.xlu0 %v811_v3 }
 0x131   :  { %v360_v5 = vpop.f32.mrb[2].mxu0 }
 0x132   :  { %v801_v7 = vsel %vm793_vm12, -inf, %v360_v5  ;;  %v1682_v8 = vpop.f32.mrb[3].mxu0  ;;  %v439_v9 = vpop.f32.mrb[2].mxu1  ;;  %vm1497_vm12 = vcmask 785920  }
 0x133   :  { %v814_v11 = vsel %vm807_vm8, %v801_v7, -inf  ;;  %v802_v12 = vsel %vm794_vm13, -inf, %v439_v9  ;;  %v1689_v13 = vpop.f32.mrb[3].mxu1  ;;  %vm1549_vm13 = vcmask 1048448  }
 0x134   :  { %815 = vmax.xlane.f32.xlu1 %v814_v11  ;;  %v817_v17 = vsel %vm807_vm8, %v802_v12, -inf  ;;  %v102_v13 = vld [vmem:[#allocation7] sm:$0xff] }
 0x138   :  { %818 = vmax.xlane.f32.xlu1 %v817_v17  ;;  %v1807_v17 = vpack.c.bf16 %v103_v14, %v102_v13 }
 0x139   :  { %v518_v19 = vpop.f32.mrb[4].mxu0 }
 0x13a   :  { %v803_v21 = vsel %vm795_vm2, -inf, %v518_v19  ;;  %v597_v22 = vpop.f32.mrb[4].mxu1  ;;  %v1696_v23 = vpop.f32.mrb[5].mxu0  ;;  %1808 = vmatpush3.bf16.msra.mxu0 %v1807_v17  ;;  %v104_v19 = vld [vmem:[#allocation7 + $0x10] sm:$0xff] }
 0x13b   :  { %v804_v24 = vsel %vm796_vm3, -inf, %v597_v22  ;;  %v820_v25 = vsel %vm807_vm8, %v803_v21, -inf  ;;  %v1703_v26 = vpop.f32.mrb[5].mxu1  ;;  %1812 = vmatprep.subr.bf16.mxu0 %v2032_v0 }
 0x13c   :  { %v823_v28 = vsel %vm807_vm8, %v804_v24, -inf  ;;  %821 = vmax.xlane.f32.xlu0 %v820_v25  ;;  %v106_v25 = vld [vmem:[#allocation7 + $0x20] sm:$0xff]  ;;  %v107_v26 = vld [vmem:[#allocation7 + $0x28] sm:$0xff] }
 0x13d   :  { %824 = vmax.xlane.f32.xlu1 %v823_v28  ;;  %v1813_v28 = vpack.c.bf16 %v107_v26, %v106_v25 }
 0x141   :  { %v676_v30 = vpop.f32.mrb[6].mxu0 }
 0x142   :  { %v805_v31 = vsel %vm797_vm4, -inf, %v676_v30  ;;  %v755_v32 = vpop.f32.mrb[6].mxu1  ;;  %v1710_v33 = vpop.f32.mrb[7].mxu0 }
 0x143   :  { %v806_v34 = vsel %vm798_vm5, -inf, %v755_v32  ;;  %v826_v35 = vsel %vm807_vm8, %v805_v31, -inf  ;;  %v1717_v36 = vpop.f32.mrb[7].mxu1  ;;  %v109_v32 = vld [vmem:[#allocation7 + $0x38] sm:$0xff] }
 0x144   :  { %v829_v37 = vsel %vm807_vm8, %v806_v34, -inf  ;;  %827 = vmax.xlane.f32.xlu0 %v826_v35 }
 0x145   :  { %830 = vmax.xlane.f32.xlu1 %v829_v37  ;;  %v110_v37 = vld [vmem:[#allocation7 + $0x40] sm:$0xff] }
 0x1b9   :  { %v810_v38 = vpop.xlane.xlu0 %809 }
 0x1ba   :  { %v832_v39 = vsub.f32 %v2207_v55, %v810_v38  ;;  %v111_v38 = vld [vmem:[#allocation7 + $0x48] sm:$0xff] }
 0x1bc   :  { %v840_v40 = vmul.f32 1.442695, %v832_v39 }
 0x1bd   :  { %v813_v41 = vpop.xlane.xlu0 %812 }
 0x1be   :  { %1850 = vpow2.f32 %v840_v40  ;;  %v833_v42 = vsub.f32 %v2211_v60, %v813_v41  ;;  %v1819_v41 = vpack.c.bf16 %v111_v38, %v110_v37 }
 0x1c0   :  { %v842_v43 = vmul.f32 1.442695, %v833_v42 }
 0x1c1   :  { %v816_v44 = vpop.xlane.xlu1 %815 }
 0x1c2   :  { %1852 = vpow2.f32 %v842_v43  ;;  %v834_v45 = vsub.f32 %v801_v7, %v816_v44  ;;  %v112_v43 = vld [vmem:[#allocation7 + $0x50] sm:$0xff]  ;;  %v113_v44 = vld [vmem:[#allocation7 + $0x58] sm:$0xff] }
 0x1c4   :  { %v844_v46 = vmul.f32 1.442695, %v834_v45 }
 0x1c5   :  { %v819_v47 = vpop.xlane.xlu1 %818 }
 0x1c6   :  { %1854 = vpow2.f32 %v844_v46  ;;  %v835_v48 = vsub.f32 %v802_v12, %v819_v47  ;;  %v1822_v46 = vpack.c.bf16 %v113_v44, %v112_v43 }
 0x1c8   :  { %v1851_v49 = vpop.eup %1850  ;;  %v846_v50 = vmul.f32 1.442695, %v835_v48 }
 0x1c9   :  { %v822_v51 = vpop.xlane.xlu0 %821  ;;  %v856_v52 = vsel %vm807_vm8, %v1851_v49, 0.0 }
 0x1ca   :  { %1856 = vpow2.f32 %v846_v50  ;;  %v825_v53 = vpop.xlane.xlu1 %824  ;;  %v836_v54 = vsub.f32 %v803_v21, %v822_v51  ;;  %857 = vadd.xlane.f32.xlu0 %v856_v52  ;;  %v1810_v21 = vpack.c.bf16 %v105_v20, %v104_v19  ;;  %v115_v51 = vld [vmem:[#allocation7 + $0x68] sm:$0xff]  ;;  %v116_v52 = vld [vmem:[#allocation7 + $0x70] sm:$0xff] }
 0x1cb   :  { %v837_v55 = vsub.f32 %v804_v24, %v825_v53  ;;  %v117_v53 = vld [vmem:[#allocation7 + $0x78] sm:$0xff] }
 0x1cc   :  { %v2224_v56 = vpop.eup %1852  ;;  %v848_v57 = vmul.f32 1.442695, %v836_v54  ;;  %1811 = vmatpush3.bf16.msra.mxu1 %v1810_v21 }
 0x1cd   :  { %v850_v58 = vmul.f32 1.442695, %v837_v55  ;;  %v859_v59 = vsel %vm807_vm8, %v2224_v56, 0.0  ;;  %1815 = vmatprep.subr.bf16.mxu1 %v2032_v0 }
 0x1ce   :  { %1858 = vpow2.f32 %v848_v57  ;;  %860 = vadd.xlane.f32.xlu1 %v859_v59 }
 0x1cf   :  { %1860 = vpow2.f32 %v850_v58  ;;  %v1828_v58 = vpack.c.bf16 %v117_v53, %v116_v52 }
 0x1d0   :  { %v2228_v60 = vpop.eup %1854 }
 0x1d1   :  { %v828_v61 = vpop.xlane.xlu0 %827  ;;  %v862_v62 = vsel %vm807_vm8, %v2228_v60, 0.0 }
 0x1d2   :  { %v831_v63 = vpop.xlane.xlu1 %830  ;;  %v838_v2 = vsub.f32 %v805_v31, %v828_v61  ;;  %863 = vadd.xlane.f32.xlu0 %v862_v62  ;;  %v108_v31 = vld [vmem:[#allocation7 + $0x30] sm:$0xff] }
 0x1d3   :  { %v839_v3 = vsub.f32 %v806_v34, %v831_v63  ;;  %v1816_v34 = vpack.c.bf16 %v109_v32, %v108_v31 }
 0x1d4   :  { %v2232_v4 = vpop.eup %1856  ;;  %v852_v5 = vmul.f32 1.442695, %v838_v2 }
 0x1d5   :  { %v854_v6 = vmul.f32 1.442695, %v839_v3  ;;  %v865_v7 = vsel %vm807_vm8, %v2232_v4, 0.0 }
 0x1d6   :  { %1862 = vpow2.f32 %v852_v5  ;;  %866 = vadd.xlane.f32.xlu1 %v865_v7 }
 0x1d7   :  { %1864 = vpow2.f32 %v854_v6 }
 0x1d8   :  { %v2236_v8 = vpop.eup %1858 }
 0x1d9   :  { %v2238_v9 = vpop.eup %1860  ;;  %v868_v10 = vsel %vm807_vm8, %v2236_v8, 0.0 }
 0x1da   :  { %v871_v11 = vsel %vm807_vm8, %v2238_v9, 0.0  ;;  %869 = vadd.xlane.f32.xlu0 %v868_v10 }
 0x1db   :  { %872 = vadd.xlane.f32.xlu1 %v871_v11 }
 0x1e0   :  { %v2244_v12 = vpop.eup %1862 }
 0x1e1   :  { %v2246_v15 = vpop.eup %1864  ;;  %v874_v16 = vsel %vm807_vm8, %v2244_v12, 0.0 }
 0x1e2   :  { %v877_v18 = vsel %vm807_vm8, %v2246_v15, 0.0  ;;  %875 = vadd.xlane.f32.xlu0 %v874_v16 }
 0x1e3   :  { %878 = vadd.xlane.f32.xlu1 %v877_v18 }
 0x257   :  { %v858_v22 = vpop.xlane.xlu0 %857 }
 0x258   :  { %1866 = vrcp.f32 %v858_v22 }
 0x25b   :  { %v861_v23 = vpop.xlane.xlu1 %860 }
 0x25c   :  { %1868 = vrcp.f32 %v861_v23 }
 0x25f   :  { %v864_v24 = vpop.xlane.xlu0 %863 }
 0x260   :  { %1870 = vrcp.f32 %v864_v24 }
 0x262   :  { %v1867_v27 = vpop.eup %1866 }
 0x263   :  { %v888_v29 = vmul.f32 %v1867_v27, %v1851_v49  ;;  %v867_v30 = vpop.xlane.xlu1 %866  ;;  %v114_v49 = vld [vmem:[#allocation7 + $0x60] sm:$0xff] }
 0x264   :  { %1872 = vrcp.f32 %v867_v30  ;;  %v1825_v57 = vpack.c.bf16 %v115_v51, %v114_v49 }
 0x265   :  { %1481 = vst.msk [vmem:[#allocation11] sm:$0xff] %vm807_vm8, %v888_v29  ;;  %1723 = vmatmul.mubr.msk.f32.vlgmr.msra.gmra.mrb[8].mxu0 %vm807_vm8, %v888_v29 }
 0x266   :  { %v1869_v33 = vpop.eup %1868  ;;  %1814 = vmatpush3.bf16.msra.mxu0 %v1813_v28  ;;  %1736 = vmatprep.mubr.msk.f32.mxu0 %vm2033_vm0, %v2034_v1 }
 0x267   :  { %v889_v35 = vmul.f32 %v1869_v33, %v2224_v56  ;;  %v870_v36 = vpop.xlane.xlu0 %869  ;;  %1818 = vmatprep.subr.bf16.mxu0 %v2032_v0 }
 0x268   :  { %v873_v39 = vpop.xlane.xlu1 %872  ;;  %1874 = vrcp.f32 %v870_v36 }
 0x269   :  { %1876 = vrcp.f32 %v873_v39  ;;  %1730 = vmatmul.mubr.msk.f32.vlgmr.msra.gmra.mrb[8].mxu1 %vm807_vm8, %v889_v35  ;;  %1488 = vrot.lane.b32.xlu0 %v889_v35, %s2036_s3 }
 0x26a   :  { %v1871_v40 = vpop.eup %1870  ;;  %1817 = vmatpush3.bf16.msra.mxu1 %v1816_v34  ;;  %1743 = vmatprep.mubr.msk.f32.mxu1 %vm2033_vm0, %v2034_v1 }
 0x26b   :  { %v890_v42 = vmul.f32 %v1871_v40, %v2228_v60  ;;  %1821 = vmatprep.subr.bf16.mxu1 %v2032_v0 }
 0x26d   :  { %1499 = vrot.lane.b32.xlu1 %v890_v42, %s2030_s2  ;;  %1737 = vmatmul.mubr.msk.f32.vlgmr.msra.gmra.mrb[10].mxu0 %vm807_vm8, %v890_v42 }
 0x26e   :  { %v1873_v45 = vpop.eup %1872  ;;  %1820 = vmatpush3.bf16.msra.mxu0 %v1819_v41  ;;  %1750 = vmatprep.mubr.msk.f32.mxu0 %vm2033_vm0, %v2034_v1 }
 0x26f   :  { %v891_v47 = vmul.f32 %v1873_v45, %v2232_v4  ;;  %v876_v48 = vpop.xlane.xlu0 %875  ;;  %1824 = vmatprep.subr.bf16.mxu0 %v2032_v0 }
 0x270   :  { %v879_v50 = vpop.xlane.xlu1 %878  ;;  %1878 = vrcp.f32 %v876_v48 }
 0x271   :  { %1880 = vrcp.f32 %v879_v50  ;;  %1744 = vmatmul.mubr.msk.f32.vlgmr.msra.gmra.mrb[10].mxu1 %vm807_vm8, %v891_v47  ;;  %1510 = vrot.lane.b32.xlu1 %v891_v47, %s2037_s1 }
 0x272   :  { %v1875_v54 = vpop.eup %1874  ;;  %1823 = vmatpush3.bf16.msra.mxu1 %v1822_v46  ;;  %1757 = vmatprep.mubr.msk.f32.mxu1 %vm2033_vm0, %v2034_v1 }
 0x273   :  { %v1877_v55 = vpop.eup %1876  ;;  %v892_v56 = vmul.f32 %v1875_v54, %v2236_v8  ;;  %1827 = vmatprep.subr.bf16.mxu1 %v2032_v0 }
 0x274   :  { %v893_v59 = vmul.f32 %v1877_v55, %v2238_v9 }
 0x275   :  { %1516 = vrot.lane.b32.xlu1 %v892_v56, %s2038_s17  ;;  %1751 = vmatmul.mubr.msk.f32.vlgmr.msra.gmra.mrb[12].mxu0 %vm807_vm8, %v892_v56 }
 0x276   :  { %1758 = vmatmul.mubr.msk.f32.vlgmr.msra.gmra.mrb[12].mxu1 %vm807_vm8, %v893_v59  ;;  %1526 = vrot.lane.b32.xlu0 %v893_v59, %s2039_s18 }
 0x277   :  { %1826 = vmatpush3.bf16.msra.mxu0 %v1825_v57  ;;  %1829 = vmatpush3.bf16.msra.mxu1 %v1828_v58 }
 0x278   :  { %1764 = vmatprep.mubr.msk.f32.mxu0 %vm2033_vm0, %v2034_v1  ;;  %1771 = vmatprep.mubr.msk.f32.mxu1 %vm2033_vm0, %v2034_v1  ;;  %vm1513_vm0 = vcmask 523648  }
 0x27a   :  { %v1879_v0 = vpop.eup %1878 }
 0x27b   :  { %v1881_v60 = vpop.eup %1880  ;;  %v894_v61 = vmul.f32 %v1879_v0, %v2244_v12 }
 0x27c   :  { %v895_v62 = vmul.f32 %v1881_v60, %v2246_v15 }
 0x27d   :  { %1536 = vrot.lane.b32.xlu1 %v894_v61, %s2040_s19  ;;  %1765 = vmatmul.mubr.msk.f32.vlgmr.msra.gmra.mrb[14].mxu0 %vm807_vm8, %v894_v61 }
 0x27e   :  { %1772 = vmatmul.mubr.msk.f32.vlgmr.msra.gmra.mrb[14].mxu1 %vm807_vm8, %v895_v62  ;;  %vm1486_vm8 = vcmask 523520  }
 0x2db   :  { %v1489_v63 = vpop.permute.xlu0 %1488 }
 0x2dc   :  { %1492 = vst.msk [vmem:[#allocation11] sm:$0xff] %vm1491_vm6, %v1489_v63 }
 0x2df   :  { %v1500_v2 = vpop.permute.xlu1 %1499 }
 0x2e0   :  { %1503 = vst.msk [vmem:[#allocation11] sm:$0xff] %vm1502_vm7, %v1500_v2 }
 0x2e3   :  { %v1511_v1 = vpop.permute.xlu1 %1510 }
 0x2e4   :  { %1514 = vst.msk [vmem:[#allocation11] sm:$0xff] %vm1513_vm0, %v1511_v1 }
 0x2e7   :  { %v1517_v3 = vpop.permute.xlu1 %1516 }
 0x2e8   :  { %1520 = vst.msk [vmem:[#allocation11] sm:$0xff] %vm1519_vm9, %v1517_v3  ;;  %v1527_v4 = vpop.permute.xlu0 %1526 }
 0x2e9   :  { %1530 = vst.msk [vmem:[#allocation11] sm:$0xff] %vm1529_vm10, %v1527_v4 }
 0x2ef   :  { %v1537_v5 = vpop.permute.xlu1 %1536 }
 0x2f0   :  { %1540 = vst.msk [vmem:[#allocation11] sm:$0xff] %vm1539_vm11, %v1537_v5 }
 0x338   :  { %v965_v6 = vpop.f32.mrb[8].mxu0 }
 0x339   :  { %1480 = vst.msk [vmem:[#allocation10] sm:$0xff] %vm126_vm1, %v965_v6  ;;  %v1724_v7 = vpop.f32.mrb[9].mxu0 }
 0x33c   :  { %v1038_v8 = vpop.f32.mrb[8].mxu1 }
 0x33d   :  { %v1731_v9 = vpop.f32.mrb[9].mxu1  ;;  %1483 = vrot.lane.b32.xlu0 %v1038_v8, %s2030_s2 }
 0x340   :  { %v1111_v10 = vpop.f32.mrb[10].mxu0 }
 0x341   :  { %1494 = vrot.lane.b32.xlu1 %v1111_v10, %s2038_s17  ;;  %v1738_v11 = vpop.f32.mrb[11].mxu0 }
 0x344   :  { %v1184_v12 = vpop.f32.mrb[10].mxu1 }
 0x345   :  { %v1745_v13 = vpop.f32.mrb[11].mxu1  ;;  %1505 = vrot.lane.b32.xlu0 %v1184_v12, %s2040_s19 }
 0x348   :  { %v1257_v14 = vpop.f32.mrb[12].mxu0 }
 0x349   :  { %1515 = vst.msk [vmem:[#allocation10 + $0x8] sm:$0xff] %vm126_vm1, %v1257_v14  ;;  %v1330_v15 = vpop.f32.mrb[12].mxu1  ;;  %v1752_v16 = vpop.f32.mrb[13].mxu0  ;;  %vm1508_vm1 = vcmask 1048320  }
 0x34a   :  { %v1759_v17 = vpop.f32.mrb[13].mxu1  ;;  %1522 = vrot.lane.b32.xlu1 %v1330_v15, %s2030_s2 }
 0x350   :  { %v1403_v18 = vpop.f32.mrb[14].mxu0 }
 0x351   :  { %v1476_v19 = vpop.f32.mrb[14].mxu1  ;;  %1532 = vrot.lane.b32.xlu0 %v1403_v18, %s2038_s17  ;;  %v1766_v20 = vpop.f32.mrb[15].mxu0 }
 0x352   :  { %v1773_v21 = vpop.f32.mrb[15].mxu1  ;;  %1542 = vrot.lane.b32.xlu1 %v1476_v19, %s2040_s19 }
 0x355   :  { %1546 = vrot.lane.b32.xlu0 %v895_v62, %s2041_s20 }
 0x3af   :  { %v1484_v22 = vpop.permute.xlu0 %1483 }
 0x3b0   :  { %1487 = vst.msk [vmem:[#allocation10] sm:$0xff] %vm1486_vm8, %v1484_v22 }
 0x3b3   :  { %v1495_v23 = vpop.permute.xlu1 %1494 }
 0x3b4   :  { %1498 = vst.msk [vmem:[#allocation10] sm:$0xff] %vm1497_vm12, %v1495_v23 }
 0x3b7   :  { %v1506_v24 = vpop.permute.xlu0 %1505 }
 0x3b8   :  { %1509 = vst.msk [vmem:[#allocation10] sm:$0xff] %vm1508_vm1, %v1506_v24 }
 0x3bc   :  { %v1523_v25 = vpop.permute.xlu1 %1522 }
 0x3bd   :  { %1525 = vst.msk [vmem:[#allocation10 + $0x8] sm:$0xff] %vm1486_vm8, %v1523_v25 }
 0x3c3   :  { %v1533_v26 = vpop.permute.xlu0 %1532 }
 0x3c4   :  { %v1543_v27 = vpop.permute.xlu1 %1542  ;;  %1535 = vst.msk [vmem:[#allocation10 + $0x8] sm:$0xff] %vm1497_vm12, %v1533_v26 }
 0x3c5   :  { %1545 = vst.msk [vmem:[#allocation10 + $0x8] sm:$0xff] %vm1508_vm1, %v1543_v27 }
 0x3c6   :  { %1981 = shalt.err (!%p1978_p8)
}
 0x3c7   :  { %s1982_s29 = scalar_lea.hbm %s2326_s4, 256 }
 0x3c8   :  { %p1983_p9 = scmp.ne.s32.totalorder %s2326_s4, %s1982_s29  ;;  %p1986_p10 = scmp.lt.u32.totalorder %s1982_s29, %s2326_s4 }
 0x3ca   :  { %p1988_p11 = pnand %p1986_p10, %p1983_p9 }
 0x3cc   :  { %1991 = shalt.err (!%p1988_p11)
}
 0x3cd   :  { %1560 = dma.vmem_to_hbm [thread:$0]  %s1558_s23, 256, %s2326_s4, [#allocation4]   ;;  %v1547_v28 = vpop.permute.xlu0 %1546 }
 0x3ce   :  { %1550 = vst.msk [vmem:[#allocation11] sm:$0xff] %vm1549_vm13, %v1547_v28  ;;  %s1992_s11 = scalar_lea.vmem %s1568_s25, 128  ;;  %p1997_p13 = scmp.lt.s32.totalorder %s1568_s25, %s1568_s25 }
 0x3cf   :  { %p1993_p12 = scmp.ne.s32.totalorder %s1568_s25, %s1992_s11  ;;  %p1998_p0 = scmp.lt.s32.totalorder %s1992_s11, %s1992_s11 }
 0x3d1   :  { %p1999_p1 = por %p1998_p0, %p1997_p13 }
 0x3d3   :  { %p2000_p2 = pnand %p1999_p1, %p1993_p12 }
 0x3d5   :  { %2003 = shalt.err (!%p2000_p2)
}
 0x3d6   :  { %s2004_s14 = scalar_lea.hbm %s2327_s5, 128 }
 0x3d7   :  { %p2005_p3 = scmp.ne.s32.totalorder %s2327_s5, %s2004_s14  ;;  %p2008_p4 = scmp.lt.u32.totalorder %s2004_s14, %s2327_s5 }
 0x3d9   :  { %p2010_p5 = pnand %p2008_p4, %p2005_p3 }
 0x3db   :  { %2013 = shalt.err (!%p2010_p5)
}
 0x3dc   :  { %1570 = dma.vmem_to_hbm [thread:$0]  %s1568_s25, 128, %s2327_s5, [#allocation12]  }
 0x3dd   :  { %2020 = dma.done.wait [#allocation4], 256  }
 0x3de   :  { %2021 = vsyncadd [#allocation4], 4294967040 }
 0x3df   :  { %2022 = dma.done.wait [#allocation12], 128  }
 0x3e0   :  { %2023 = vsyncadd [#allocation12], 4294967168 }
 0x3e1   :  { %1577 = vsyncpa [#allocation3], 1 }
 0x3e2   :  { %1578 = vsyncpa [#allocation6], 1 }
 0x3e3   :  { %1579 = vsyncpa [#allocation9], 1 }
 0x3e4   :  { %1580 = vsyncpa [#allocation4], 1 }
 0x3e5   :  { %1581 = vsyncpa [#allocation12], 1 }

</bundles_post_ra>
